<compile_context>
chip_gen: v6e
topology: v6e:2x2x1
jax: 0.10.0
libtpu: 0.0.40
codegen_flags: <defaults>
</compile_context>

<pallas_src>
import functools

import jax
import jax.numpy as jnp
from jax.experimental import pallas as pl
from jax.experimental.pallas import tpu as pltpu


def _round_up(n, m):
    return (n + m - 1) // m * m


def _vmem_capacity_bytes(default=64 * 1024 * 1024):
    """Physical VMEM per core; conservative (v7x-safe) fallback if unknown."""
    try:
        info = pltpu.get_tpu_info()
        cap = getattr(info, "vmem_capacity_bytes", None)
        if cap:
            return int(cap)
    except Exception:
        pass
    return default


def _ffn_kernel(x_ref, w1_ref, b1_ref, w2_ref, p_ref, o_ref, acc_ref, *, eps, d_in):
    """Grid = (row_tiles, hid_tiles); hid axis is the (arbitrary) reduction axis."""
    k = pl.program_id(1)
    n_k = pl.num_programs(1)

    @pl.when(k == 0)
    def _init():
        acc_ref[...] = jnp.zeros_like(acc_ref)

    # ---- hidden chunk k:  h_k = relu(x @ W1[:, k] + b1[k]);  acc += h_k @ W2[k, :]
    x = x_ref[...]                                            # native dtype -> MXU
    h = jnp.dot(x, w1_ref[...], preferred_element_type=jnp.float32)
    h = jnp.maximum(h + b1_ref[...].astype(jnp.float32), 0.0)  # (tile_m, tile_h) f32
    acc_ref[...] += jnp.dot(h.astype(w2_ref.dtype), w2_ref[...],
                            preferred_element_type=jnp.float32)

    # ---- last hidden chunk: bias + residual + LayerNorm, single lane-dense store
    @pl.when(k == n_k - 1)
    def _finalize():
        b2 = p_ref[0:1, :]                                    # (1, d_in_p) f32
        gamma = p_ref[1:2, :]
        beta = p_ref[2:3, :]

        # dropout(p=0) is the identity; residual cast to f32 only here (short live range)
        y = acc_ref[...] + b2 + x.astype(jnp.float32)         # (tile_m, d_in_p)

        d_in_p = y.shape[-1]
        inv_d = 1.0 / d_in
        mean = jnp.sum(y, axis=-1, keepdims=True) * inv_d      # padded lanes are 0
        centered = y - mean
        if d_in_p != d_in:                                     # static; aligned case free
            lane = jax.lax.broadcasted_iota(jnp.int32, y.shape, dimension=1)
            centered = jnp.where(lane < d_in, centered, 0.0)
        var = jnp.sum(centered * centered, axis=-1, keepdims=True) * inv_d
        out = centered * jax.lax.rsqrt(var + eps) * gamma + beta
        o_ref[...] = out.astype(o_ref.dtype)


def positionwise_feed_forward(x, w1, b1, w2, b2, gamma, beta, *, eps=1e-6, row_tile=512):
    """x: (..., d_in). w1: [d_in, d_hid], w2: [d_hid, d_in]. Returns same shape/dtype."""
    orig_shape = x.shape
    orig_dtype = x.dtype
    d_in = orig_shape[-1]
    d_hid = w1.shape[-1]
    x2 = x.reshape(-1, d_in)
    n_rows = x2.shape[0]

    d_in_p = _round_up(d_in, 128)
    pad_f = d_in_p - d_in

    # ---- per-generation VMEM budget: ~96 MiB on v5e/v6e, ~48 MiB on v7x ----------
    vmem_cap = _vmem_capacity_bytes()
    vmem_limit = max(32 * 1024 * 1024, min(int(0.75 * vmem_cap), 100 * 1024 * 1024))

    w_isz = jnp.dtype(w1.dtype).itemsize
    x_isz = jnp.dtype(orig_dtype).itemsize

    # ---- hidden-dim tile: bound per-step W1/W2 slabs (double buffered) -----------
    d_hid_128 = _round_up(d_hid, 128)
    wslab_budget = int(0.4 * vmem_limit)
    tile_h_max = d_hid_128
    while tile_h_max > 128 and 4 * d_in_p * tile_h_max * w_isz > wslab_budget:
        tile_h_max -= 128
    n_k = pl.cdiv(d_hid_128, tile_h_max)
    tile_h = _round_up(pl.cdiv(d_hid_128, n_k), 128)   # even chunks, minimal padding
    d_hid_p = tile_h * n_k
    pad_h = d_hid_p - d_hid

    # ---- row tile: large (fewer grid steps), >=2 row steps for v7x megacore ------
    tile_m = min(row_tile, _round_up(n_rows, 8))
    if n_rows > 8 and pl.cdiv(n_rows, tile_m) < 2:
        tile_m = _round_up(pl.cdiv(n_rows, 2), 8)
    row_budget = int(0.45 * vmem_limit)

    def _row_bytes(tm):
        return (4 * tm * d_in_p * x_isz      # x + out tiles, double buffered
                + tm * d_in_p * 4            # f32 accumulator scratch
                + tm * tile_h * 4)           # live f32 hidden chunk

    while tile_m > 8 and _row_bytes(tile_m) > row_budget:
        tile_m = max(8, _round_up(tile_m // 2, 8))
    n_i = pl.cdiv(n_rows, tile_m)

    # ---- parameter prep: zero work when dims are already 128-aligned -------------
    # TODO(synk): for fully jit-hot serving paths, pre-pad / pre-stack the weights
    # once at load time instead of per call.
    if pad_f:
        x2 = jnp.pad(x2, ((0, 0), (0, pad_f)))
    w1_p = jnp.pad(w1, ((0, pad_f), (0, pad_h))) if (pad_f or pad_h) else w1
    w2_p = jnp.pad(w2, ((0, pad_h), (0, pad_f))) if (pad_f or pad_h) else w2
    b1_p = (jnp.pad(b1, ((0, pad_h),)) if pad_h else b1).reshape(1, d_hid_p)
    params = jnp.stack([b2, gamma, beta]).astype(jnp.float32)   # (3, d_in)
    if pad_f:
        params = jnp.pad(params, ((0, 0), (0, pad_f)))          # pads: gamma=beta=0

    cost = pl.CostEstimate(
        flops=4 * n_rows * d_in_p * d_hid_p,                    # two matmuls
        transcendentals=n_rows,                                 # rsqrt per row
        bytes_accessed=(2 * n_rows * d_in_p * x_isz             # x in + y out
                        + 2 * d_in_p * d_hid_p * w_isz          # W1 + W2
                        + (3 * d_in_p + d_hid_p) * 4),
    )

    out = pl.pallas_call(
        functools.partial(_ffn_kernel, eps=eps, d_in=d_in),
        out_shape=jax.ShapeDtypeStruct((n_rows, d_in_p), orig_dtype),
        grid_spec=pltpu.PrefetchScalarGridSpec(
            num_scalar_prefetch=0,
            grid=(n_i, n_k),                                    # rows parallel, hid last
            in_specs=[
                pl.BlockSpec((tile_m, d_in_p), lambda i, k: (i, 0)),   # x row tile
                pl.BlockSpec((d_in_p, tile_h), lambda i, k: (0, k)),   # W1 column slab
                pl.BlockSpec((1, tile_h), lambda i, k: (0, k)),        # b1 slab
                pl.BlockSpec((tile_h, d_in_p), lambda i, k: (k, 0)),   # W2 row slab
                pl.BlockSpec((3, d_in_p), lambda i, k: (0, 0)),        # b2/gamma/beta
            ],
            out_specs=pl.BlockSpec((tile_m, d_in_p), lambda i, k: (i, 0)),
            scratch_shapes=[pltpu.VMEM((tile_m, d_in_p), jnp.float32)],
        ),
        compiler_params=pltpu.CompilerParams(
            dimension_semantics=("parallel", "arbitrary"),
            vmem_limit_bytes=vmem_limit,
        ),
        cost_estimate=cost,
    )(x2, w1_p, b1_p, w2_p, params)

    if pad_f:
        out = out[:, :d_in]
    return out.reshape(orig_shape)


def _reference(x, w1, b1, w2, b2, gamma, beta, eps=1e-6):
    h = jnp.maximum(x @ w1 + b1, 0.0)
    y = h @ w2 + b2 + x
    mean = jnp.mean(y, axis=-1, keepdims=True)
    var = jnp.mean((y - mean) ** 2, axis=-1, keepdims=True)
    return (y - mean) / jnp.sqrt(var + eps) * gamma + beta


if __name__ == "__main__":
    key = jax.random.PRNGKey(0)

    def make_case(k, batch, seq, d_in, d_hid):
        k_x, k_w1, k_b1, k_w2, k_b2 = jax.random.split(k, 5)
        x = jax.random.normal(k_x, (batch, seq, d_in), dtype=jnp.float32)
        lim1 = 1.0 / d_in ** 0.5
        lim2 = 1.0 / d_hid ** 0.5
        w1 = jax.random.uniform(k_w1, (d_in, d_hid), jnp.float32, -lim1, lim1)
        b1 = jax.random.uniform(k_b1, (d_hid,), jnp.float32, -lim1, lim1)
        w2 = jax.random.uniform(k_w2, (d_hid, d_in), jnp.float32, -lim2, lim2)
        b2 = jax.random.uniform(k_b2, (d_in,), jnp.float32, -lim2, lim2)
        gamma = jnp.ones((d_in,), jnp.float32)    # LayerNorm weight init
        beta = jnp.zeros((d_in,), jnp.float32)    # LayerNorm bias init
        return x, w1, b1, w2, b2, gamma, beta

    k1, k2 = jax.random.split(key)
    cases = [
        make_case(k1, 2, 8, 32, 64),      # non-128-aligned dims -> guarded padded path
        make_case(k2, 2, 10, 128, 256),   # 128-aligned fast path + ragged row block
    ]
    for args in cases:
        x = args[0]
        out = jax.block_until_ready(positionwise_feed_forward(*args))
        ref = _reference(*args)
        assert out.shape == x.shape and out.dtype == x.dtype
        assert jnp.allclose(out, ref, atol=1e-4, rtol=1e-4), "mismatch vs reference"

    print("KERNEL_OK")
</pallas_src>

<mosaic_0001>
module attributes {stable_mosaic.version = 11 : i64} {
  func.func @_ffn_kernel(%arg0: i32, %arg1: i32, %arg2: memref<8x128xf32, #tpu.memory_space<vmem>>, %arg3: memref<128x128xf32, #tpu.memory_space<vmem>>, %arg4: memref<1x128xf32, #tpu.memory_space<vmem>>, %arg5: memref<128x128xf32, #tpu.memory_space<vmem>>, %arg6: memref<3x128xf32, #tpu.memory_space<vmem>>, %arg7: memref<8x128xf32, #tpu.memory_space<vmem>>, %arg8: memref<8x128xf32, #tpu.memory_space<vmem>>) attributes {dimension_semantics = [#tpu.dimension_semantics<parallel>, #tpu.dimension_semantics<arbitrary>], iteration_bounds = array<i64: 2, 1>, scalar_prefetch = 0 : i64, scratch_operands = 1 : i64, tpu.core_type = #tpu.core_type<tc>, window_params = [{transform_indices = @transform_0, window_bounds = array<i64: 8, 128>}, {transform_indices = @transform_1, window_bounds = array<i64: 128, 128>}, {transform_indices = @transform_2, window_bounds = array<i64: 1, 128>}, {transform_indices = @transform_3, window_bounds = array<i64: 128, 128>}, {pipeline_mode = #tpu.pipeline_mode<synchronous>, transform_indices = @transform_4, window_bounds = array<i64: 3, 128>}, {transform_indices = @transform_5, window_bounds = array<i64: 8, 128>}]} {
    %c0_i32 = arith.constant 0 : i32
    %0 = arith.cmpi eq, %arg1, %c0_i32 : i32
    %1 = arith.extui %0 : i1 to i32
    %c0_i32_0 = arith.constant 0 : i32
    %2 = arith.cmpi ne, %1, %c0_i32_0 : i32
    scf.if %2 {
      %cst_16 = arith.constant 0.000000e+00 : f32
      %19 = vector.broadcast %cst_16 : f32 to vector<8x128xf32>
      %c0_17 = arith.constant 0 : index
      %c0_18 = arith.constant 0 : index
      %20 = vector.load %arg8[%c0_17, %c0_18] : memref<8x128xf32, #tpu.memory_space<vmem>>, vector<8x128xf32>
      tpu.vector_store %arg8[%c0_17, %c0_18], %19 {strides = array<i32>} : memref<8x128xf32, #tpu.memory_space<vmem>>, vector<8x128xf32>,
    } else {
    }
    %c0 = arith.constant 0 : index
    %c0_1 = arith.constant 0 : index
    %3 = vector.load %arg2[%c0, %c0_1] : memref<8x128xf32, #tpu.memory_space<vmem>>, vector<8x128xf32>
    %c0_2 = arith.constant 0 : index
    %c0_3 = arith.constant 0 : index
    %4 = vector.load %arg3[%c0_2, %c0_3] : memref<128x128xf32, #tpu.memory_space<vmem>>, vector<128x128xf32>
    %cst = arith.constant dense<0.000000e+00> : vector<8x128xf32>
    %5 = tpu.matmul %3, %4, %cst {dimension_numbers = #tpu.dot_dimension_numbers<[1], [0], [0], [1], [0, 0, 1, 1], [], []>} : vector<8x128xf32>, vector<128x128xf32>, vector<8x128xf32> -> vector<8x128xf32>
    %c0_4 = arith.constant 0 : index
    %c0_5 = arith.constant 0 : index
    %6 = vector.load %arg4[%c0_4, %c0_5] : memref<1x128xf32, #tpu.memory_space<vmem>>, vector<1x128xf32>
    %7 = vector.broadcast %6 : vector<1x128xf32> to vector<8x128xf32>
    %8 = arith.addf %5, %7 : vector<8x128xf32>
    %cst_6 = arith.constant 0.000000e+00 : f32
    %9 = vector.broadcast %cst_6 : f32 to vector<8x128xf32>
    %10 = arith.maximumf %8, %9 : vector<8x128xf32>
    %c0_7 = arith.constant 0 : index
    %c0_8 = arith.constant 0 : index
    %11 = vector.load %arg8[%c0_7, %c0_8] : memref<8x128xf32, #tpu.memory_space<vmem>>, vector<8x128xf32>
    %c0_9 = arith.constant 0 : index
    %c0_10 = arith.constant 0 : index
    %12 = vector.load %arg5[%c0_9, %c0_10] : memref<128x128xf32, #tpu.memory_space<vmem>>, vector<128x128xf32>
    %cst_11 = arith.constant dense<0.000000e+00> : vector<8x128xf32>
    %13 = tpu.matmul %10, %12, %cst_11 {dimension_numbers = #tpu.dot_dimension_numbers<[1], [0], [0], [1], [0, 0, 1, 1], [], []>} : vector<8x128xf32>, vector<128x128xf32>, vector<8x128xf32> -> vector<8x128xf32>
    %14 = arith.addf %11, %13 : vector<8x128xf32>
    %c0_12 = arith.constant 0 : index
    %c0_13 = arith.constant 0 : index
    %15 = vector.load %arg8[%c0_12, %c0_13] : memref<8x128xf32, #tpu.memory_space<vmem>>, vector<8x128xf32>
    tpu.vector_store %arg8[%c0_12, %c0_13], %14 {strides = array<i32>} : memref<8x128xf32, #tpu.memory_space<vmem>>, vector<8x128xf32>,
    %c0_i32_14 = arith.constant 0 : i32
    %16 = arith.cmpi eq, %arg1, %c0_i32_14 : i32
    %17 = arith.extui %16 : i1 to i32
    %c0_i32_15 = arith.constant 0 : i32
    %18 = arith.cmpi ne, %17, %c0_i32_15 : i32
    scf.if %18 {
      %c0_16 = arith.constant 0 : index
      %c0_17 = arith.constant 0 : index
      %19 = vector.load %arg6[%c0_16, %c0_17] : memref<3x128xf32, #tpu.memory_space<vmem>>, vector<1x128xf32>
      %c1 = arith.constant 1 : index
      %c0_18 = arith.constant 0 : index
      %20 = vector.load %arg6[%c1, %c0_18] : memref<3x128xf32, #tpu.memory_space<vmem>>, vector<1x128xf32>
      %c2 = arith.constant 2 : index
      %c0_19 = arith.constant 0 : index
      %21 = vector.load %arg6[%c2, %c0_19] : memref<3x128xf32, #tpu.memory_space<vmem>>, vector<1x128xf32>
      %c0_20 = arith.constant 0 : index
      %c0_21 = arith.constant 0 : index
      %22 = vector.load %arg8[%c0_20, %c0_21] : memref<8x128xf32, #tpu.memory_space<vmem>>, vector<8x128xf32>
      %23 = vector.broadcast %19 : vector<1x128xf32> to vector<8x128xf32>
      %24 = arith.addf %22, %23 : vector<8x128xf32>
      %25 = arith.addf %24, %3 : vector<8x128xf32>
      %cst_22 = arith.constant dense<0.000000e+00> : vector<8xf32>
      %26 = vector.multi_reduction <add>, %25, %cst_22 [1] : vector<8x128xf32> to vector<8xf32>
      %27 = vector.shape_cast %26 : vector<8xf32> to vector<8x1xf32>
      %cst_23 = arith.constant 3.125000e-02 : f32
      %28 = vector.broadcast %cst_23 : f32 to vector<8x1xf32>
      %29 = arith.mulf %27, %28 : vector<8x1xf32>
      %30 = vector.broadcast %29 : vector<8x1xf32> to vector<8x128xf32>
      %31 = arith.subf %25, %30 : vector<8x128xf32>
      %32 = tpu.iota {dimensions = array<i32: 1>} : vector<8x128xi32>
      %c32_i32 = arith.constant 32 : i32
      %33 = vector.broadcast %c32_i32 : i32 to vector<8x128xi32>
      %34 = arith.cmpi slt, %32, %33 : vector<8x128xi32>
      %cst_24 = arith.constant 0.000000e+00 : f32
      %35 = vector.broadcast %cst_24 : f32 to vector<8x128xf32>
      %36 = arith.select %34, %31, %35 : vector<8x128xi1>, vector<8x128xf32>
      %37 = arith.mulf %36, %36 : vector<8x128xf32>
      %cst_25 = arith.constant dense<0.000000e+00> : vector<8xf32>
      %38 = vector.multi_reduction <add>, %37, %cst_25 [1] : vector<8x128xf32> to vector<8xf32>
      %39 = vector.shape_cast %38 : vector<8xf32> to vector<8x1xf32>
      %cst_26 = arith.constant 3.125000e-02 : f32
      %40 = vector.broadcast %cst_26 : f32 to vector<8x1xf32>
      %41 = arith.mulf %39, %40 : vector<8x1xf32>
      %cst_27 = arith.constant 9.99999997E-7 : f32
      %42 = vector.broadcast %cst_27 : f32 to vector<8x1xf32>
      %43 = arith.addf %41, %42 : vector<8x1xf32>
      %44 = math.rsqrt %43 : vector<8x1xf32>
      %45 = vector.broadcast %44 : vector<8x1xf32> to vector<8x128xf32>
      %46 = arith.mulf %36, %45 : vector<8x128xf32>
      %47 = vector.broadcast %20 : vector<1x128xf32> to vector<8x128xf32>
      %48 = arith.mulf %46, %47 : vector<8x128xf32>
      %49 = vector.broadcast %21 : vector<1x128xf32> to vector<8x128xf32>
      %50 = arith.addf %48, %49 : vector<8x128xf32>
      %c0_28 = arith.constant 0 : index
      %c0_29 = arith.constant 0 : index
      %51 = vector.load %arg7[%c0_28, %c0_29] : memref<8x128xf32, #tpu.memory_space<vmem>>, vector<8x128xf32>
      tpu.vector_store %arg7[%c0_28, %c0_29], %50 {strides = array<i32>} : memref<8x128xf32, #tpu.memory_space<vmem>>, vector<8x128xf32>,
    } else {
    }
    return
  }
  func.func @transform_0(%arg0: i32, %arg1: i32) -> (i32, i32) {
    %c0_i32 = arith.constant 0 : i32
    %c0_i32_0 = arith.constant 0 : i32
    return %arg0, %c0_i32 : i32, i32
  }
  func.func @transform_1(%arg0: i32, %arg1: i32) -> (i32, i32) {
    %c0_i32 = arith.constant 0 : i32
    %c0_i32_0 = arith.constant 0 : i32
    return %c0_i32, %arg1 : i32, i32
  }
  func.func @transform_2(%arg0: i32, %arg1: i32) -> (i32, i32) {
    %c0_i32 = arith.constant 0 : i32
    %c0_i32_0 = arith.constant 0 : i32
    return %c0_i32, %arg1 : i32, i32
  }
  func.func @transform_3(%arg0: i32, %arg1: i32) -> (i32, i32) {
    %c0_i32 = arith.constant 0 : i32
    %c0_i32_0 = arith.constant 0 : i32
    return %arg1, %c0_i32 : i32, i32
  }
  func.func @transform_4(%arg0: i32, %arg1: i32) -> (i32, i32) {
    %c0_i32 = arith.constant 0 : i32
    %c0_i32_0 = arith.constant 0 : i32
    %c0_i32_1 = arith.constant 0 : i32
    return %c0_i32, %c0_i32_0 : i32, i32
  }
  func.func @transform_5(%arg0: i32, %arg1: i32) -> (i32, i32) {
    %c0_i32 = arith.constant 0 : i32
    %c0_i32_0 = arith.constant 0 : i32
    return %arg0, %c0_i32 : i32, i32
  }
}

</mosaic_0001>

<bundles_post_ra>
// kernel: tpu_custom_call.1
= control target key start
LH: loop header
LB: loop body
LE: loop exit
PB: predicated region body
PF: predicated region fallthrough
CT: control target
= control target key end

     0   :  { %s1312_s0 = inlined_call_operand.hbm [shape: f32[16,128], index: 0, kind: input, shape index: {}]   ;;  %s1313_s1 = inlined_call_operand.hbm [shape: f32[128,128], index: 1, kind: input, shape index: {}]   ;;  %s1314_s2 = inlined_call_operand.vmem [shape: f32[1,128], index: 2, kind: input, shape index: {}]   ;;  %s1315_s3 = inlined_call_operand.hbm [shape: f32[128,128], index: 3, kind: input, shape index: {}]   ;;  %s1316_s4 = inlined_call_operand.vmem [shape: f32[3,128], index: 4, kind: input, shape index: {}]   ;;  %s1317_s5 = inlined_call_operand.hbm [shape: f32[16,128], index: 5, kind: output, shape index: {}]  }
   0x1   :  { %1321 = sst [smem:[#allocation13_spill]] %s1313_s1 }
   0x2   :  { %10 = vsyncpa [#allocation4], 0 }
   0x3   :  { %12 = vsyncpa [#allocation4 + $0x1], 0 }
   0x4   :  { %13 = vsyncpa [#allocation7], 0 }
   0x5   :  { %14 = vsyncpa [#allocation5], 0 }
   0x6   :  { %16 = vsyncpa [#allocation5 + $0x1], 0  ;;  %s1085_s18 = smov 0   ;;  %s1087_s19 = smov 0  }
   0x7   :  { %s1089_s20 = smov 0   ;;  %s1091_s21 = smov 0  }
   0x8   :  { %s1093_s22 = smov 0   ;;  %s1095_s23 = smov 0  }
   0x9 LB: > { %s666_s24 = sadd.s32 4294967295, %s1045_s23   ;;  %s667_s25 = sadd.s32 4294967294, %s1045_s23   ;;  %s1045_s23 = sphi %s1095_s23, %s22_s23   ;;  %s1041_s22 = sphi %s1093_s22, %s1339_s22   ;;  %s1037_s21 = sphi %s1091_s21, %s1338_s21   ;;  %s1033_s20 = sphi %s1089_s20, %s1337_s20   ;;  %s1029_s19 = sphi %s1087_s19, %s1336_s19   ;;  %s1025_s18 = sphi %s1085_s18, %s1335_s18  }
   0xa   : > { %p54_p0 = scmp.ne.s32.totalorder %s1029_s19, %s1025_s18  ;;  %p1119_p1 = scmp.eq.s32.totalorder %s666_s24, 0 }
   0xb   : > { %p1123_p2 = scmp.eq.s32.totalorder %s666_s24, 1  ;;  %p183_p3 = scmp.eq.s32.totalorder %s667_s25, 1 }
   0xc   : > { %s1322_s26 = scalar_select %p1119_p1, 1, 0 }
   0xd   : > { %p1129_p4 = por %p1119_p1, %p54_p0  ;;  %p668_p5 = scmp.ge.s32.totalorder %s1045_s23, 1 }
   0xe   : > { %p1134_p6 = por %p183_p3, %p54_p0  ;;  %p190_p7 = scmp.lt.s32.totalorder %s1045_s23, 3 }
   0xf   : > { %s1324_s28 = scalar_select %p1129_p4, 1, 0 }
  0x10   : > { %s1325_s29 = scalar_select %p1134_p6, 1, 0 }
  0x11   : > { %p1139_p8 = pnand %p668_p5, %p190_p7  ;;  %s1047_s6 = smov [#allocation6]  }
  0x12   : > { %s204_s7 = sshll.u32 %s1047_s6, 4  ;;  %s1048_s9 = smov [#allocation8]   ;;  %s205_s7 = int_to_ptr.vmem [resolvable:$true] %s204_s7 }
  0x13   : > { %p804_p9 = pneg %p1139_p8  ;;  %s226_s10 = sshll.u32 %s1048_s9, 4  ;;  %s227_s10 = int_to_ptr.vmem [resolvable:$true] %s226_s10 }
  0x14   : > { %s892_s11 = scalar_lea.vmem %s205_s7, 2048  ;;  %p900_p5 = scmp.lt.s32.totalorder %s205_s7, %s205_s7 }
  0x15   : > { %p1148_p11 = pnand %p804_p9, %p1119_p1  ;;  %p893_p13 = scmp.ne.s32.totalorder %s205_s7, %s892_s11 }
  0x16   : > { %p901_p7 = scmp.lt.s32.totalorder %s892_s11, %s892_s11 }
  0x17   : > { %p883_p12 = pneg %p1148_p11 }
  0x18   : > { %p902_p10 = por %p901_p7, %p900_p5 }
  0x19   : > { %p895_p0 = pnand %p893_p13, %p883_p12 }
  0x1b   : > { %p896_p3 = pneg %p895_p0 }
  0x1d   : > { %p903_p9 = pnand %p902_p10, %p896_p3 }
  0x1f   : > { %906 = shalt.err (!%p903_p9)
}
  0x20   : > { %s1049_s12 = smov 128   ;;  %s1050_s13 = smov 8  }
  0x21   : > { %s1328_s1 = sld [smem:[#allocation13_spill]]  ;;  %s918_s16 = scalar_lea.vmem %s227_s10, 2048 }
  0x22   : > { %p919_p6 = scmp.ne.s32.totalorder %s227_s10, %s918_s16  ;;  %p926_p1 = scmp.lt.s32.totalorder %s227_s10, %s227_s10 }
  0x23   : > { %p927_p4 = scmp.lt.s32.totalorder %s918_s16, %s918_s16 }
  0x24   : > { %p921_p13 = pnand %p919_p6, %p883_p12 }
  0x25   : > { %p928_p5 = por %p927_p4, %p926_p1 }
  0x26   : > { %p922_p0 = pneg %p921_p13 }
  0x27   : > { %807 = dma.hbm_to_vmem [thread:$0]  (!%p1148_p11), %s1328_s1, 2048, %s205_s7, [#allocation7], %s1049_s12, %s1049_s12, %s1050_s13  }
  0x28   : > { %p929_p10 = pnand %p928_p5, %p922_p0 }
  0x2a   : > { %932 = shalt.err (!%p929_p10)
}
  0x2b   : > { %810 = dma.hbm_to_vmem [thread:$0]  (!%p1148_p11), %s1315_s3, 2048, %s227_s10, [#allocation7], %s1049_s12, %s1049_s12, %s1050_s13  }
  0x2c   : > { %s34_s25 = sadd.s32 1, %s1041_s22  ;;  %s41_s6 = sadd.s32 1, %s1033_s20 }
  0x2d   : > { %p36_p1 = scmp.ge.s32.totalorder %s34_s25, 2  ;;  %p48_p4 = scmp.ne.s32.totalorder %s1033_s20, %s1029_s19 }
  0x2e   : > { %p49_p6 = scmp.eq.s32.totalorder %s1045_s23, 0  ;;  %p821_p12 = scmp.lt.s32.totalorder %s1045_s23, 2 }
  0x2f   : > { %s1341_s25 = smov (%p36_p1, %s34_s25), 0  ;;  %p1180_p7 = por %p1123_p2, %p48_p4 }
  0x30   : > { %p50_p3 = por %p49_p6, %p48_p4  ;;  %s38_s8 = ssub.s32 %s1041_s22, %s1341_s25 }
  0x31   : > { %s243_s9 = sand.u32 1, %s1033_s20   ;;  %p39_p9 = scmp.eq.s32.totalorder %s38_s8, 0 }
  0x32   : > { %s673_s10 = sshll.u32 %s243_s9, 3  ;;  %s674_s11 = sshll.u32 %s1041_s22, 7 }
  0x33   : > { %s1189_s12 = scalar_select %p39_p9, %s1033_s20, %s41_s6  }
  0x34   : > { %s252_s15 = scalar_lea.hbm %s1312_s0, %s674_s11  ;;  %s247_s16 = scalar_lea.vmem [#allocation3], %s673_s10 }
  0x35   : > { %s254_s17 = sshll.u32 %s247_s16, 4  ;;  %p1196_p11 = pnand %p821_p12, %p50_p3  ;;  %s255_s17 = int_to_ptr.vmem [resolvable:$true] %s254_s17 }
  0x36   : > { %s244_s24 = scalar_lea.sflag [#allocation4], %s243_s9  ;;  %s946_s8 = scalar_lea.vmem %s255_s17, 128 }
  0x37   : > { %p935_p2 = pneg %p1196_p11  ;;  %p947_p13 = scmp.ne.s32.totalorder %s255_s17, %s946_s8 }
  0x38   : > { %s1051_s6 = smov [#allocation3]  }
  0x39   : > { %p949_p0 = pnand %p947_p13, %p935_p2  ;;  %s951_s1 = sshll.u32 %s1051_s6, 4  ;;  %s952_s1 = int_to_ptr.vmem [resolvable:$false] %s951_s1 }
  0x3a   : > { %s953_s11 = scalar_lea.vmem %s952_s1, 256  ;;  %p954_p10 = scmp.lt.s32.totalorder %s255_s17, %s952_s1 }
  0x3b   : > { %p950_p5 = pneg %p949_p0  ;;  %p955_p1 = scmp.lt.s32.totalorder %s953_s11, %s946_s8 }
  0x3d   : > { %p956_p4 = por %p955_p1, %p954_p10 }
  0x3f   : > { %p957_p6 = pnand %p956_p4, %p950_p5 }
  0x41   : > { %960 = shalt.err (!%p957_p6)
}
  0x42   : > { %814 = dma.hbm_to_vmem [thread:$0]  (!%p1196_p11), %s252_s15, 128, %s255_s17, %s244_s24  }
  0x43   : > { %263 = sbr.rel (%p1139_p8) target bundleno = 824 (0x338), region = 40  ;;  %s1207_s9 = sand.u32 (!%p1139_p8), 1, %s1029_s19  }
  0x44   : > { %s676_s10 = sshll.u32 (!%p1139_p8), %s1207_s9, 3  ;;  %s266_s13 = scalar_lea.sflag (!%p1139_p8), [#allocation4], %s1207_s9 }
  0x45   : > { %s1213_s1 = scalar_lea.vmem (!%p1139_p8), [#allocation3], %s676_s10  ;;  %p1331_p12 = scmp.ne.s32.totalorder (!%p1139_p8), %s1324_s28, 0 }
  0x48   : > { %1012 = dma.done.wait (%p1331_p12), %s266_s13, 128  }
  0x49   : > { %1014 = vsyncadd (%p1331_p12), %s266_s13, 4294967168  ;;  %p1332_p3 = scmp.ne.s32.totalorder %s1322_s26, 0 }
  0x4b   : > { %1016 = dma.done.wait (%p1332_p3), [#allocation7], 4096  }
  0x4c   : > { %1018 = vsyncadd (%p1332_p3), [#allocation7], 4294963200  ;;  %v1052_v0 = vmov 0.0   ;;  %vm1053_vm0 = vmmov 0   ;;  %v332_v1 = vld [vmem:[#allocation6 + $0x78] sm:$0xff]  ;;  %v331_v2 = vld [vmem:[#allocation6 + $0x70] sm:$0xff]  ;;  %v517_v44 = vlaneseq }
  0x4d   : > { %722 = vmatprep.subr.mxu0 %v1052_v0  ;;  %754 = vmatprep.mubr.msk.f32.mxu0 %vm1053_vm0, %v1052_v0  ;;  %v330_v3 = vld [vmem:[#allocation6 + $0x68] sm:$0xff]  ;;  %v329_v4 = vld [vmem:[#allocation6 + $0x60] sm:$0xff]  ;;  %v427_v5 = vld [vmem:[#allocation8 + $0x78] sm:$0xff]  ;;  %s685_s24 = sshll.u32 %s1037_s21, 7  ;;  %s306_s8 = scalar_lea.vmem [#allocation9], %s676_s10 }
  0x4e   : > { %757 = vmatprep.subr.mxu1 %v1052_v0  ;;  %789 = vmatprep.mubr.msk.f32.mxu1 %vm1053_vm0, %v1052_v0  ;;  %v328_v6 = vld [vmem:[#allocation6 + $0x58] sm:$0xff]  ;;  %v426_v7 = vld [vmem:[#allocation8 + $0x70] sm:$0xff]  ;;  %v425_v8 = vld [vmem:[#allocation8 + $0x68] sm:$0xff]  ;;  %v518_v45 = vand.u32 127, %v517_v44  ;;  %s553_s6 = sshll.u32 %s306_s8, 4  ;;  %s540_s26 = scalar_lea.sflag [#allocation5], %s1207_s9  ;;  %s554_s6 = int_to_ptr.vmem [resolvable:$true] %s553_s6 }
  0x4f   : > { %723 = vmatpush3.msra.mxu0 %v332_v1  ;;  %758 = vmatpush3.msra.mxu1 %v427_v5  ;;  %v327_v9 = vld [vmem:[#allocation6 + $0x50] sm:$0xff]  ;;  %v424_v10 = vld [vmem:[#allocation8 + $0x60] sm:$0xff]  ;;  %v326_v11 = vld [vmem:[#allocation6 + $0x48] sm:$0xff]  ;;  %s961_s28 = scalar_lea.vmem %s554_s6, 128  ;;  %s1054_s30 = smov [#allocation9]  }
  0x50   : > { %724 = vmatprep.subr.mxu0 %v1052_v0  ;;  %759 = vmatprep.subr.mxu1 %v1052_v0  ;;  %v423_v12 = vld [vmem:[#allocation8 + $0x58] sm:$0xff]  ;;  %v325_v13 = vld [vmem:[#allocation6 + $0x40] sm:$0xff]  ;;  %v422_v14 = vld [vmem:[#allocation8 + $0x50] sm:$0xff]  ;;  %vm519_vm1 = vcmp.lt.s32.totalorder %v518_v45, 32  ;;  %p962_p8 = scmp.ne.s32.totalorder %s554_s6, %s961_s28  ;;  %s965_s14 = sshll.u32 %s1054_s30, 4  ;;  %s966_s14 = int_to_ptr.vmem [resolvable:$false] %s965_s14 }
  0x51   : > { %725 = vmatpush3.msra.mxu0 %v331_v2  ;;  %760 = vmatpush3.msra.mxu1 %v426_v7  ;;  %v324_v15 = vld [vmem:[#allocation6 + $0x38] sm:$0xff]  ;;  %v421_v16 = vld [vmem:[#allocation8 + $0x48] sm:$0xff]  ;;  %v323_v17 = vld [vmem:[#allocation6 + $0x30] sm:$0xff]  ;;  %s967_s21 = scalar_lea.vmem %s966_s14, 256  ;;  %p968_p2 = scmp.lt.s32.totalorder %s554_s6, %s966_s14 }
  0x52   : > { %726 = vmatprep.subr.mxu0 %v1052_v0  ;;  %761 = vmatprep.subr.mxu1 %v1052_v0  ;;  %v420_v18 = vld [vmem:[#allocation8 + $0x40] sm:$0xff]  ;;  %v322_v19 = vld [vmem:[#allocation6 + $0x28] sm:$0xff]  ;;  %v419_v20 = vld [vmem:[#allocation8 + $0x38] sm:$0xff]  ;;  %p963_p9 = pnand %p962_p8, %p1180_p7  ;;  %p969_p13 = scmp.lt.s32.totalorder %s967_s21, %s961_s28 }
  0x53   : > { %727 = vmatpush3.msra.mxu0 %v330_v3  ;;  %762 = vmatpush3.msra.mxu1 %v425_v8  ;;  %v321_v21 = vld [vmem:[#allocation6 + $0x20] sm:$0xff]  ;;  %v418_v22 = vld [vmem:[#allocation8 + $0x30] sm:$0xff]  ;;  %v320_v23 = vld [vmem:[#allocation6 + $0x18] sm:$0xff] }
  0x54   : > { %728 = vmatprep.subr.mxu0 %v1052_v0  ;;  %763 = vmatprep.subr.mxu1 %v1052_v0  ;;  %v417_v24 = vld [vmem:[#allocation8 + $0x28] sm:$0xff]  ;;  %v319_v25 = vld [vmem:[#allocation6 + $0x10] sm:$0xff]  ;;  %v416_v26 = vld [vmem:[#allocation8 + $0x20] sm:$0xff]  ;;  %p964_p11 = pneg %p963_p9  ;;  %p970_p0 = por %p969_p13, %p968_p2 }
  0x55   : > { %729 = vmatpush3.msra.mxu0 %v329_v4  ;;  %764 = vmatpush3.msra.mxu1 %v424_v10  ;;  %v318_v27 = vld [vmem:[#allocation6 + $0x8] sm:$0xff]  ;;  %v415_v28 = vld [vmem:[#allocation8 + $0x18] sm:$0xff]  ;;  %v317_v29 = vld [vmem:[#allocation6] sm:$0xff] }
  0x56   : > { %730 = vmatprep.subr.mxu0 %v1052_v0  ;;  %765 = vmatprep.subr.mxu1 %v1052_v0  ;;  %v316_v30 = vld [vmem:[%s1213_s1] sm:$0xff]  ;;  %v413_v32 = vld [vmem:[#allocation8 + $0x8] sm:$0xff]  ;;  %v412_v33 = vld [vmem:[#allocation8] sm:$0xff]  ;;  %s551_s1 = scalar_lea.hbm %s1317_s5, %s685_s24  ;;  %p971_p5 = pnand %p970_p0, %p964_p11 }
  0x57   : > { %731 = vmatpush3.msra.mxu0 %v328_v6  ;;  %766 = vmatpush3.msra.mxu1 %v423_v12  ;;  %v414_v31 = vld [vmem:[#allocation8 + $0x10] sm:$0xff] }
  0x58   : > { %732 = vmatprep.subr.mxu0 %v1052_v0  ;;  %767 = vmatprep.subr.mxu1 %v1052_v0  ;;  %v680_v34 = vld [vmem:[%s1314_s2] ss:$0 sm:$0xff]  ;;  %v682_v55 = vld [vmem:[%s1316_s4 + $0x1] ss:$0 sm:$0xff]  ;;  %v683_v57 = vld [vmem:[%s1316_s4 + $0x2] ss:$0 sm:$0xff] }
  0x59   : > { %733 = vmatpush3.msra.mxu0 %v327_v9  ;;  %768 = vmatpush3.msra.mxu1 %v422_v14  ;;  %v681_v39 = vld [vmem:[%s1316_s4] ss:$0 sm:$0xff] }
  0x5a   : > { %734 = vmatprep.subr.mxu0 %v1052_v0  ;;  %769 = vmatprep.subr.mxu1 %v1052_v0 }
  0x5b   : > { %735 = vmatpush3.msra.mxu0 %v326_v11  ;;  %770 = vmatpush3.msra.mxu1 %v421_v16 }
  0x5c   : > { %736 = vmatprep.subr.mxu0 %v1052_v0  ;;  %771 = vmatprep.subr.mxu1 %v1052_v0 }
  0x5d   : > { %737 = vmatpush3.msra.mxu0 %v325_v13  ;;  %772 = vmatpush3.msra.mxu1 %v420_v18 }
  0x5e   : > { %738 = vmatprep.subr.mxu0 %v1052_v0  ;;  %773 = vmatprep.subr.mxu1 %v1052_v0 }
  0x5f   : > { %739 = vmatpush3.msra.mxu0 %v324_v15  ;;  %774 = vmatpush3.msra.mxu1 %v419_v20 }
  0x60   : > { %740 = vmatprep.subr.mxu0 %v1052_v0  ;;  %775 = vmatprep.subr.mxu1 %v1052_v0 }
  0x61   : > { %741 = vmatpush3.msra.mxu0 %v323_v17  ;;  %776 = vmatpush3.msra.mxu1 %v418_v22 }
  0x62   : > { %742 = vmatprep.subr.mxu0 %v1052_v0  ;;  %777 = vmatprep.subr.mxu1 %v1052_v0 }
  0x63   : > { %743 = vmatpush3.msra.mxu0 %v322_v19  ;;  %778 = vmatpush3.msra.mxu1 %v417_v24 }
  0x64   : > { %744 = vmatprep.subr.mxu0 %v1052_v0  ;;  %779 = vmatprep.subr.mxu1 %v1052_v0 }
  0x65   : > { %745 = vmatpush3.msra.mxu0 %v321_v21  ;;  %780 = vmatpush3.msra.mxu1 %v416_v26 }
  0x66   : > { %746 = vmatprep.subr.mxu0 %v1052_v0  ;;  %781 = vmatprep.subr.mxu1 %v1052_v0 }
  0x67   : > { %747 = vmatpush3.msra.mxu0 %v320_v23  ;;  %782 = vmatpush3.msra.mxu1 %v415_v28 }
  0x68   : > { %748 = vmatprep.subr.mxu0 %v1052_v0  ;;  %783 = vmatprep.subr.mxu1 %v1052_v0 }
  0x69   : > { %749 = vmatpush3.msra.mxu0 %v319_v25  ;;  %784 = vmatpush3.msra.mxu1 %v414_v31 }
  0x6a   : > { %750 = vmatprep.subr.mxu0 %v1052_v0  ;;  %785 = vmatprep.subr.mxu1 %v1052_v0 }
  0x6b   : > { %751 = vmatpush3.msra.mxu0 %v318_v27  ;;  %786 = vmatpush3.msra.mxu1 %v413_v32 }
  0x6c   : > { %752 = vmatprep.subr.mxu0 %v1052_v0  ;;  %787 = vmatprep.subr.mxu1 %v1052_v0 }
  0x6d   : > { %753 = vmatpush3.msra.mxu0 %v317_v29  ;;  %788 = vmatpush3.msra.mxu1 %v412_v33 }
  0x6e   : > { %755 = vmatmul.mubr.f32.vlgmr.msra.gmra.mxu0 %v316_v30 }
 0x12e   : > { %v406_v35 = vpop.f32.mrf.mxu0 }
 0x12f   : > { %v407_v36 = vadd.f32 %v680_v34, %v406_v35 }
 0x130   : > { %v756_v37 = vpop.f32.mrf.mxu0 }
 0x131   : > { %v410_v38 = vmax.f32 %v407_v36, 0.0 }
 0x133   : > { %790 = vmatmul.mubr.f32.vlgmr.msra.gmra.mxu1 %v410_v38 }
 0x1f3   : > { %v494_v40 = vpop.f32.mrf.mxu1 }
 0x1f4   : > { %v511_v41 = vadd.f32 %v681_v39, %v494_v40 }
 0x1f5   : > { %v791_v42 = vpop.f32.mrf.mxu1 }
 0x1f6   : > { %v512_v43 = vadd.f32 %v511_v41, %v316_v30 }
 0x1f8   : > { %513 = vadd.xlane.f32.xlu0 %v512_v43 }
 0x281   : > { %v514_v46 = vpop.xlane.xlu0 %513 }
 0x282   : > { %v515_v47 = vmul.f32 0.03125, %v514_v46 }
 0x284   : > { %v516_v48 = vsub.f32 %v512_v43, %v515_v47 }
 0x286   : > { %v520_v49 = vsel %vm519_vm1, %v516_v48, 0.0 }
 0x287   : > { %v521_v50 = vmul.f32 %v520_v49, %v520_v49 }
 0x289   : > { %522 = vadd.xlane.f32.xlu0 %v521_v50 }
 0x312   : > { %v523_v51 = vpop.xlane.xlu0 %522 }
 0x313   : > { %v524_v52 = vmul.f32 0.03125, %v523_v51 }
 0x315   : > { %v525_v53 = vadd.f32 1e-06, %v524_v52 }
 0x317   : > { %879 = vrsqrt.f32 %v525_v53 }
 0x324   : > { %v880_v54 = vpop.eup %879 }
 0x325   : > { %v527_v56 = vmul.f32 %v880_v54, %v520_v49 }
 0x327   : > { %v532_v58 = vmul.f32 %v682_v55, %v527_v56 }
 0x329   : > { %v537_v59 = vadd.f32 %v683_v57, %v532_v58 }
 0x32b   : > { %538 = vst [vmem:[%s306_s8] sm:$0xff] %v537_v59 }
 0x32c   : > { %974 = shalt.err (!%p971_p5)
}
 0x32d   : > { %s975_s10 = scalar_lea.hbm %s551_s1, 128  ;;  %s979_s16 = scalar_lea.hbm %s1317_s5, 256 }
 0x32e   : > { %p976_p10 = scmp.ne.s32.totalorder %s551_s1, %s975_s10  ;;  %p980_p6 = scmp.lt.s32.totalorder %s551_s1, %s1317_s5 }
 0x32f   : > { %p981_p12 = scmp.lt.s32.totalorder %s979_s16, %s975_s10 }
 0x330   : > { %p977_p1 = pnand %p976_p10, %p1180_p7 }
 0x331   : > { %p982_p3 = por %p981_p12, %p980_p6 }
 0x332   : > { %p978_p4 = pneg %p977_p1 }
 0x334   : > { %p983_p8 = pnand %p982_p3, %p978_p4 }
 0x336   : > { %986 = shalt.err (!%p983_p8)
}
 0x337   : > { %802 = dma.vmem_to_hbm [thread:$0]  (%p1180_p7), %s554_s6, 128, %s551_s1, %s540_s26  }
 0x338 PF: > { %s565_s24 = sand.u32 1, %s1025_s18   ;;  %p1333_p9 = scmp.ne.s32.totalorder %s1325_s29, 0 }
 0x339   : > { %p1334_p11 = scmp.ge.s32.totalorder %s1045_s23, 2  ;;  %s566_s8 = scalar_lea.sflag [#allocation5], %s565_s24 }
 0x33b   : > { %p816_p2 = pnand %p1334_p11, %p1333_p9 }
 0x33d   : > { %p817_p13 = pneg %p816_p2 }
 0x33f   : > { %1020 = dma.done.wait (%p817_p13), %s566_s8, 128  }
 0x340   : > { %1022 = vsyncadd (%p817_p13), %s566_s8, 4294967168  ;;  %s22_s23 = sadd.s32 1, %s1045_s23   ;;  %s1335_s18 = smov %s1029_s19 }
 0x341   : > { %p19_p0 = scmp.ge.s32.totalorder %s22_s23, 4   ;;  %s1336_s19 = smov %s1033_s20 }
 0x342   : > { %s1337_s20 = smov %s1189_s12  ;;  %s1338_s21 = smov %s1041_s22 }
 0x343   : > { %s1339_s22 = smov %s1341_s25  ;;  %21 = sbr.rel (!%p19_p0) target bundleno = 9 (0x9), region = 106 }
 0x348   :  { %571 = vsyncpa [#allocation4], 1 }
 0x349   :  { %573 = vsyncpa [#allocation4 + $0x1], 1 }
 0x34a   :  { %574 = vsyncpa [#allocation7], 1 }
 0x34b   :  { %575 = vsyncpa [#allocation5], 1 }
 0x34c   :  { %577 = vsyncpa [#allocation5 + $0x1], 1 }

</bundles_post_ra>
